<compile_context>
chip_gen: v7x
topology: tpu7x:2x2x1
jax: 0.10.0
libtpu: 0.0.40
codegen_flags: <defaults>
</compile_context>

<pallas_src>
import functools
import math

import jax
import jax.numpy as jnp
import numpy as np
from jax.experimental import pallas as pl
from jax.experimental.pallas import tpu as pltpu

LANE = 128


def resmlp_kernel(xT_ref, tT_ref, sT_ref,
                  w_start_ref, b_start_ref,
                  wm1_ref, bm1_ref, wm2_ref, bm2_ref,
                  w_style_ref, b_style_ref,
                  wq1_ref, bq1_ref, wq2_ref, bq2_ref,
                  w_end_ref, b_end_ref,
                  out_ref,
                  *, n_mid, n_mid2, n_dim, scale):
    f32 = jnp.float32
    bf16 = jnp.bfloat16
    relu = lambda v: jnp.maximum(v, 0.0)

    def dot(w_bf16, act_f32):
        # bf16 operands, f32 accumulation on the MXU; elementwise math stays f32.
        return jnp.dot(w_bf16, act_f32.astype(bf16), preferred_element_type=f32)

    xT = xT_ref[...]            # (ch_pos,  T) f32
    tT = tT_ref[...]            # (ch_time, T) f32
    sT = sT_ref[...]            # (ch_time, T) f32

    # start: Linear(cat([x, t, s])) fused into ONE dot; sublane concat is 8-aligned.
    xin = jnp.concatenate([xT, tT, sT], axis=0)                 # (ch_in, T)
    out = relu(dot(w_start_ref[...], xin) + b_start_ref[...])   # (n_dim, T)

    # mid residual blocks: out = relu((Lin2(relu(Lin1(out))) + out) * scale)
    for i in range(n_mid):
        b1 = bm1_ref[i]
        b2 = bm2_ref[i]
        h = relu(dot(wm1_ref[i], out) + b1)
        h = dot(wm2_ref[i], h) + b2
        out = relu((h + out) * scale)

    # AdaIN(out, cat([t, s])): single fused style dot; rows 0=scale, 1=shift,
    # rows 2..7 are zero padding (ignored).
    ts = jnp.concatenate([tT, sT], axis=0)                      # (style_dim, T)
    style = dot(w_style_ref[...], ts) + b_style_ref[...]        # (8, T)
    row = jax.lax.broadcasted_iota(jnp.int32, style.shape, 0)
    sc_ada = jnp.sum(jnp.where(row == 0, style, 0.0), axis=0, keepdims=True)  # (1, T)
    sh_ada = jnp.sum(jnp.where(row == 1, style, 0.0), axis=0, keepdims=True)  # (1, T)

    mean = jnp.mean(out, axis=0, keepdims=True)                 # (1, T)
    cen = out - mean
    # torch.std defaults to the unbiased estimator (ddof=1)
    var = jnp.sum(cen * cen, axis=0, keepdims=True) * (1.0 / (n_dim - 1))
    std = jnp.sqrt(var) + 1e-6
    inv_std = pl.reciprocal(std, approx=True)                   # EUP slot
    out = cen * (inv_std * sc_ada) + sh_ada

    # mid2 residual blocks: out = relu((Lin2(relu(Lin1(relu(out)))) + out) * scale)
    for i in range(n_mid2):
        a = relu(out)
        b1 = bq1_ref[i]
        b2 = bq2_ref[i]
        h = relu(dot(wq1_ref[i], a) + b1)
        h = dot(wq2_ref[i], h) + b2
        out = relu((h + out) * scale)

    # end Linear(n_dim, 4) (output rows padded to 8); sigmoid on row 3 only.
    e = dot(w_end_ref[...], out) + b_end_ref[...]               # (8, T)
    row_e = jax.lax.broadcasted_iota(jnp.int32, e.shape, 0)
    out_ref[...] = jnp.where(row_e == 3, jax.nn.sigmoid(e), e)


def init_params(key, ch_pos, ch_time, n_dim, n_layer):
    """Deterministic synthetic parameters (shapes per ResMLP.__init__).

    Linear weights are stored as (in, out) so y = x @ W + b (reference layout).
    """
    ch_in = ch_pos + ch_time * 2
    style_dim = ch_time * 2
    n_mid = n_layer // 2
    n_mid2 = n_mid - 1
    ks = jax.random.split(key, 14)

    def lin(kw, kb, fan_in, fan_out, stack=None):
        wshape = (fan_in, fan_out) if stack is None else (stack, fan_in, fan_out)
        bshape = (1, fan_out) if stack is None else (stack, 1, fan_out)
        sc = 1.0 / math.sqrt(fan_in)
        w = jax.random.uniform(kw, wshape, jnp.float32, -sc, sc)
        b = jax.random.uniform(kb, bshape, jnp.float32, -sc, sc)
        return w, b

    ws, bs = lin(ks[0], ks[1], ch_in, n_dim)
    wm1, bm1 = lin(ks[2], ks[3], n_dim, n_dim, stack=n_mid)
    wm2, bm2 = lin(ks[4], ks[5], n_dim, n_dim, stack=n_mid)
    wt, bt = lin(ks[6], ks[7], style_dim, 2)
    wq1, bq1 = lin(ks[8], ks[9], n_dim, n_dim, stack=n_mid2)
    wq2, bq2 = lin(ks[10], ks[11], n_dim, n_dim, stack=n_mid2)
    we, be = lin(ks[12], ks[13], n_dim, 4)

    return dict(ws=ws, bs=bs, wm1=wm1, bm1=bm1, wm2=wm2, bm2=bm2,
                wt=wt, bt=bt, wq1=wq1, bq1=bq1, wq2=wq2, bq2=bq2,
                we=we, be=be)


def prepare_kernel_params(params):
    """Transpose to the batch-on-lanes layout, cast mat weights to bf16, pad the
    tiny style/end output dims up to 8 rows (zero weights+bias in the padding)."""
    bf16 = jnp.bfloat16
    f32 = jnp.float32

    wT = lambda w: jnp.transpose(w).astype(bf16)                 # (in,out)->(out,in)
    wTs = lambda w: jnp.transpose(w, (0, 2, 1)).astype(bf16)     # stacked
    bT = lambda b: jnp.transpose(b).astype(f32)                  # (1,out)->(out,1)
    bTs = lambda b: jnp.transpose(b, (0, 2, 1)).astype(f32)      # stacked

    w_style = jnp.pad(jnp.transpose(params["wt"]), ((0, 6), (0, 0))).astype(bf16)  # (8, style_dim)
    b_style = jnp.pad(jnp.transpose(params["bt"]), ((0, 6), (0, 0))).astype(f32)   # (8, 1)
    w_end = jnp.pad(jnp.transpose(params["we"]), ((0, 4), (0, 0))).astype(bf16)    # (8, n_dim)
    b_end = jnp.pad(jnp.transpose(params["be"]), ((0, 4), (0, 0))).astype(f32)     # (8, 1)

    return (wT(params["ws"]), bT(params["bs"]),
            wTs(params["wm1"]), bTs(params["bm1"]),
            wTs(params["wm2"]), bTs(params["bm2"]),
            w_style, b_style,
            wTs(params["wq1"]), bTs(params["bq1"]),
            wTs(params["wq2"]), bTs(params["bq2"]),
            w_end, b_end)


def resmlp_forward(x, t, s, params, *, tile_n=4096):
    """Pallas forward.  feat is unused by the PyTorch forward, so not taken here."""
    N = x.shape[0]
    n_dim = params["ws"].shape[1]
    n_mid = params["wm1"].shape[0]
    n_mid2 = params["wq1"].shape[0]

    # Lane tile: multiple of 128; when N allows, cap so the grid has >=4 steps
    # (engages both v7x TensorCores via dimension_semantics=("parallel",);
    # harmless on single-TC v5e/v6e, per-step overhead is ~0.35us).
    tile_n = max(LANE, (tile_n // LANE) * LANE)
    n_ceil = ((N + LANE - 1) // LANE) * LANE
    four_step_cap = max(LANE, (n_ceil // 4) // LANE * LANE)
    tile_n = max(LANE, min(tile_n, four_step_cap))
    n_pad = ((N + tile_n - 1) // tile_n) * tile_n
    grid = (n_pad // tile_n,)

    # Batch-on-lanes: transpose inputs once in the wrapper (features -> sublanes).
    def prep(a):
        aT = jnp.transpose(a)
        return jnp.pad(aT, ((0, 0), (0, n_pad - N))) if n_pad != N else aT

    xT, tT, sT = prep(x), prep(t), prep(s)

    def lane_spec(n_feat):
        return pl.BlockSpec((n_feat, tile_n), lambda i: (0, i))

    def resident_spec(a):  # full array, same block every step -> stays in VMEM
        return pl.BlockSpec(a.shape, lambda i, _nd=a.ndim: (0,) * _nd)

    weights = prepare_kernel_params(params)
    in_specs = ([lane_spec(xT.shape[0]), lane_spec(tT.shape[0]), lane_spec(sT.shape[0])]
                + [resident_spec(a) for a in weights])
    out_specs = pl.BlockSpec((8, tile_n), lambda i: (0, i))
    out_shape = jax.ShapeDtypeStruct((8, n_pad), jnp.float32)

    kernel = functools.partial(resmlp_kernel,
                               n_mid=n_mid, n_mid2=n_mid2,
                               n_dim=n_dim, scale=1.0 / math.sqrt(2.0))

    # VMEM limit scales with the tile; <=48 MiB keeps headroom on v7x (64 MiB phys).
    vmem_bytes = (32 if tile_n <= 2048 else 48) * 1024 * 1024

    out8 = pl.pallas_call(
        kernel,
        out_shape=out_shape,
        grid_spec=pltpu.PrefetchScalarGridSpec(
            num_scalar_prefetch=0,
            grid=grid,
            in_specs=in_specs,
            out_specs=out_specs),
        compiler_params=pltpu.CompilerParams(
            dimension_semantics=("parallel",),
            vmem_limit_bytes=vmem_bytes),
    )(xT, tT, sT, *weights)

    eT = jnp.transpose(out8[:4, :N])     # (N, 4); sigmoid already applied to col 3
    return eT[:, 0:3], eT[:, 3:4]


def resmlp_reference(x, t, s, params):
    """Pure-JAX f32 mirror of the PyTorch forward."""
    scale = 1.0 / math.sqrt(2.0)
    relu = lambda v: jnp.maximum(v, 0.0)
    out = relu(jnp.concatenate([x, t, s], -1) @ params["ws"] + params["bs"])
    for i in range(params["wm1"].shape[0]):
        h = relu(out @ params["wm1"][i] + params["bm1"][i])
        h = h @ params["wm2"][i] + params["bm2"][i]
        out = relu((h + out) * scale)
    style = jnp.concatenate([t, s], -1) @ params["wt"] + params["bt"]
    mean = jnp.mean(out, -1, keepdims=True)
    cen = out - mean
    std = jnp.sqrt(jnp.sum(cen * cen, -1, keepdims=True) / (out.shape[-1] - 1)) + 1e-6
    out = cen / std * style[:, 0:1] + style[:, 1:2]
    for i in range(params["wq1"].shape[0]):
        a = relu(out)
        h = relu(a @ params["wq1"][i] + params["bq1"][i])
        h = h @ params["wq2"][i] + params["bq2"][i]
        out = relu((h + out) * scale)
    e = out @ params["we"] + params["be"]
    return e[:, 0:3], jax.nn.sigmoid(e[:, 3:4])


def resmlp_reference_bf16(x, t, s, params):
    """Mirror of the kernel's mixed precision: bf16 dot operands, f32 accumulation,
    f32 elementwise (the kernel's approx reciprocal is the only unmirrored op)."""
    scale = 1.0 / math.sqrt(2.0)
    relu = lambda v: jnp.maximum(v, 0.0)
    bf16 = jnp.bfloat16

    def dot(a, w):
        return jnp.dot(a.astype(bf16), w.astype(bf16),
                       preferred_element_type=jnp.float32)

    out = relu(dot(jnp.concatenate([x, t, s], -1), params["ws"]) + params["bs"])
    for i in range(params["wm1"].shape[0]):
        h = relu(dot(out, params["wm1"][i]) + params["bm1"][i])
        h = dot(h, params["wm2"][i]) + params["bm2"][i]
        out = relu((h + out) * scale)
    style = dot(jnp.concatenate([t, s], -1), params["wt"]) + params["bt"]
    mean = jnp.mean(out, -1, keepdims=True)
    cen = out - mean
    std = jnp.sqrt(jnp.sum(cen * cen, -1, keepdims=True) / (out.shape[-1] - 1)) + 1e-6
    out = cen / std * style[:, 0:1] + style[:, 1:2]
    for i in range(params["wq1"].shape[0]):
        a = relu(out)
        h = relu(dot(a, params["wq1"][i]) + params["bq1"][i])
        h = dot(h, params["wq2"][i]) + params["bq2"][i]
        out = relu((h + out) * scale)
    e = dot(out, params["we"]) + params["be"]
    return e[:, 0:3], jax.nn.sigmoid(e[:, 3:4])


if __name__ == "__main__":
    # ResMLP(ch_pos=16, ch_time=8, n_dim=32, n_layer=4) -> ch_in=32, style_dim=16,
    # n_mid=2, n_mid2=1.  N=300 with the 128-lane tile exercises a 3-step grid
    # plus the batch-padding path (300 -> 384).
    N, ch_pos, ch_time, n_dim, n_layer = 300, 16, 8, 32, 4

    key = jax.random.PRNGKey(0)
    kx, kt, ks_, kf, kp = jax.random.split(key, 5)
    x = jax.random.normal(kx, (N, ch_pos), jnp.float32)
    t = jax.random.normal(kt, (N, ch_time), jnp.float32)
    s = jax.random.normal(ks_, (N, ch_time), jnp.float32)
    feat = jax.random.normal(kf, (N, n_dim), jnp.float32)  # unused by forward (as in PyTorch)

    params = init_params(kp, ch_pos, ch_time, n_dim, n_layer)

    rgb, occ = resmlp_forward(x, t, s, params)
    jax.block_until_ready((rgb, occ))

    # Tight check vs a mirror of the kernel's mixed precision (bf16 dots, f32 acc).
    rgb_m, occ_m = resmlp_reference_bf16(x, t, s, params)
    assert np.allclose(np.asarray(rgb), np.asarray(rgb_m), atol=2e-2, rtol=2e-2)
    assert np.allclose(np.asarray(occ), np.asarray(occ_m), atol=2e-2, rtol=2e-2)

    # Looser sanity check vs the full-f32 PyTorch-semantics reference
    # (difference is the deliberate bf16 matmul-operand rounding).
    rgb_ref, occ_ref = resmlp_reference(x, t, s, params)
    assert np.allclose(np.asarray(rgb), np.asarray(rgb_ref), atol=1e-1, rtol=1e-1)
    assert np.allclose(np.asarray(occ), np.asarray(occ_ref), atol=1e-1, rtol=1e-1)

    print("KERNEL_OK")
</pallas_src>

<mosaic_0001>
module attributes {stable_mosaic.version = 11 : i64} {
  func.func @resmlp_kernel(%arg0: i32, %arg1: memref<16x128xf32, #tpu.memory_space<vmem>>, %arg2: memref<8x128xf32, #tpu.memory_space<vmem>>, %arg3: memref<8x128xf32, #tpu.memory_space<vmem>>, %arg4: memref<32x32xbf16, #tpu.memory_space<vmem>>, %arg5: memref<32x1xf32, #tpu.memory_space<vmem>>, %arg6: memref<2x32x32xbf16, #tpu.memory_space<vmem>>, %arg7: memref<2x32x1xf32, #tpu.memory_space<vmem>>, %arg8: memref<2x32x32xbf16, #tpu.memory_space<vmem>>, %arg9: memref<2x32x1xf32, #tpu.memory_space<vmem>>, %arg10: memref<8x16xbf16, #tpu.memory_space<vmem>>, %arg11: memref<8x1xf32, #tpu.memory_space<vmem>>, %arg12: memref<1x32x32xbf16, #tpu.memory_space<vmem>>, %arg13: memref<1x32x1xf32, #tpu.memory_space<vmem>>, %arg14: memref<1x32x32xbf16, #tpu.memory_space<vmem>>, %arg15: memref<1x32x1xf32, #tpu.memory_space<vmem>>, %arg16: memref<8x32xbf16, #tpu.memory_space<vmem>>, %arg17: memref<8x1xf32, #tpu.memory_space<vmem>>, %arg18: memref<8x128xf32, #tpu.memory_space<vmem>>) attributes {dimension_semantics = [#tpu.dimension_semantics<parallel>], iteration_bounds = array<i64: 3>, scalar_prefetch = 0 : i64, scratch_operands = 0 : i64, tpu.core_type = #tpu.core_type<tc>, window_params = [{transform_indices = @transform_0, window_bounds = array<i64: 16, 128>}, {transform_indices = @transform_1, window_bounds = array<i64: 8, 128>}, {transform_indices = @transform_2, window_bounds = array<i64: 8, 128>}, {pipeline_mode = #tpu.pipeline_mode<synchronous>, transform_indices = @transform_3, window_bounds = array<i64: 32, 32>}, {pipeline_mode = #tpu.pipeline_mode<synchronous>, transform_indices = @transform_4, window_bounds = array<i64: 32, 1>}, {pipeline_mode = #tpu.pipeline_mode<synchronous>, transform_indices = @transform_5, window_bounds = array<i64: 2, 32, 32>}, {pipeline_mode = #tpu.pipeline_mode<synchronous>, transform_indices = @transform_6, window_bounds = array<i64: 2, 32, 1>}, {pipeline_mode = #tpu.pipeline_mode<synchronous>, transform_indices = @transform_7, window_bounds = array<i64: 2, 32, 32>}, {pipeline_mode = #tpu.pipeline_mode<synchronous>, transform_indices = @transform_8, window_bounds = array<i64: 2, 32, 1>}, {pipeline_mode = #tpu.pipeline_mode<synchronous>, transform_indices = @transform_9, window_bounds = array<i64: 8, 16>}, {pipeline_mode = #tpu.pipeline_mode<synchronous>, transform_indices = @transform_10, window_bounds = array<i64: 8, 1>}, {pipeline_mode = #tpu.pipeline_mode<synchronous>, transform_indices = @transform_11, window_bounds = array<i64: 1, 32, 32>}, {pipeline_mode = #tpu.pipeline_mode<synchronous>, transform_indices = @transform_12, window_bounds = array<i64: 1, 32, 1>}, {pipeline_mode = #tpu.pipeline_mode<synchronous>, transform_indices = @transform_13, window_bounds = array<i64: 1, 32, 32>}, {pipeline_mode = #tpu.pipeline_mode<synchronous>, transform_indices = @transform_14, window_bounds = array<i64: 1, 32, 1>}, {pipeline_mode = #tpu.pipeline_mode<synchronous>, transform_indices = @transform_15, window_bounds = array<i64: 8, 32>}, {pipeline_mode = #tpu.pipeline_mode<synchronous>, transform_indices = @transform_16, window_bounds = array<i64: 8, 1>}, {transform_indices = @transform_17, window_bounds = array<i64: 8, 128>}]} {
    %c0 = arith.constant 0 : index
    %c0_0 = arith.constant 0 : index
    %0 = vector.load %arg1[%c0, %c0_0] : memref<16x128xf32, #tpu.memory_space<vmem>>, vector<16x128xf32>
    %c0_1 = arith.constant 0 : index
    %c0_2 = arith.constant 0 : index
    %1 = vector.load %arg2[%c0_1, %c0_2] : memref<8x128xf32, #tpu.memory_space<vmem>>, vector<8x128xf32>
    %c0_3 = arith.constant 0 : index
    %c0_4 = arith.constant 0 : index
    %2 = vector.load %arg3[%c0_3, %c0_4] : memref<8x128xf32, #tpu.memory_space<vmem>>, vector<8x128xf32>
    %3 = tpu.concatenate %0, %1, %2 in 0 : vector<16x128xf32>, vector<8x128xf32>, vector<8x128xf32> -> vector<32x128xf32>
    %c0_5 = arith.constant 0 : index
    %c0_6 = arith.constant 0 : index
    %4 = vector.load %arg4[%c0_5, %c0_6] : memref<32x32xbf16, #tpu.memory_space<vmem>>, vector<32x32xbf16>
    %5 = arith.truncf %3 : vector<32x128xf32> to vector<32x128xbf16>
    %cst = arith.constant dense<0.000000e+00> : vector<32x128xf32>
    %6 = tpu.matmul %4, %5, %cst {dimension_numbers = #tpu.dot_dimension_numbers<[1], [0], [0], [1], [0, 0, 1, 1], [], []>} : vector<32x32xbf16>, vector<32x128xbf16>, vector<32x128xf32> -> vector<32x128xf32>
    %c0_7 = arith.constant 0 : index
    %c0_8 = arith.constant 0 : index
    %7 = vector.load %arg5[%c0_7, %c0_8] : memref<32x1xf32, #tpu.memory_space<vmem>>, vector<32x1xf32>
    %8 = vector.broadcast %7 : vector<32x1xf32> to vector<32x128xf32>
    %9 = arith.addf %6, %8 : vector<32x128xf32>
    %cst_9 = arith.constant 0.000000e+00 : f32
    %10 = vector.broadcast %cst_9 : f32 to vector<32x128xf32>
    %11 = arith.maximumf %9, %10 : vector<32x128xf32>
    %c0_10 = arith.constant 0 : index
    %c0_11 = arith.constant 0 : index
    %c0_12 = arith.constant 0 : index
    %12 = vector.load %arg7[%c0_10, %c0_11, %c0_12] : memref<2x32x1xf32, #tpu.memory_space<vmem>>, vector<1x32x1xf32>
    %13 = vector.shape_cast %12 : vector<1x32x1xf32> to vector<32x1xf32>
    %c0_13 = arith.constant 0 : index
    %c0_14 = arith.constant 0 : index
    %c0_15 = arith.constant 0 : index
    %14 = vector.load %arg9[%c0_13, %c0_14, %c0_15] : memref<2x32x1xf32, #tpu.memory_space<vmem>>, vector<1x32x1xf32>
    %15 = vector.shape_cast %14 : vector<1x32x1xf32> to vector<32x1xf32>
    %c0_16 = arith.constant 0 : index
    %c0_17 = arith.constant 0 : index
    %c0_18 = arith.constant 0 : index
    %16 = vector.load %arg6[%c0_16, %c0_17, %c0_18] : memref<2x32x32xbf16, #tpu.memory_space<vmem>>, vector<1x32x32xbf16>
    %17 = vector.shape_cast %16 : vector<1x32x32xbf16> to vector<32x32xbf16>
    %18 = arith.truncf %11 : vector<32x128xf32> to vector<32x128xbf16>
    %cst_19 = arith.constant dense<0.000000e+00> : vector<32x128xf32>
    %19 = tpu.matmul %17, %18, %cst_19 {dimension_numbers = #tpu.dot_dimension_numbers<[1], [0], [0], [1], [0, 0, 1, 1], [], []>} : vector<32x32xbf16>, vector<32x128xbf16>, vector<32x128xf32> -> vector<32x128xf32>
    %20 = vector.broadcast %13 : vector<32x1xf32> to vector<32x128xf32>
    %21 = arith.addf %19, %20 : vector<32x128xf32>
    %cst_20 = arith.constant 0.000000e+00 : f32
    %22 = vector.broadcast %cst_20 : f32 to vector<32x128xf32>
    %23 = arith.maximumf %21, %22 : vector<32x128xf32>
    %c0_21 = arith.constant 0 : index
    %c0_22 = arith.constant 0 : index
    %c0_23 = arith.constant 0 : index
    %24 = vector.load %arg8[%c0_21, %c0_22, %c0_23] : memref<2x32x32xbf16, #tpu.memory_space<vmem>>, vector<1x32x32xbf16>
    %25 = vector.shape_cast %24 : vector<1x32x32xbf16> to vector<32x32xbf16>
    %26 = arith.truncf %23 : vector<32x128xf32> to vector<32x128xbf16>
    %cst_24 = arith.constant dense<0.000000e+00> : vector<32x128xf32>
    %27 = tpu.matmul %25, %26, %cst_24 {dimension_numbers = #tpu.dot_dimension_numbers<[1], [0], [0], [1], [0, 0, 1, 1], [], []>} : vector<32x32xbf16>, vector<32x128xbf16>, vector<32x128xf32> -> vector<32x128xf32>
    %28 = vector.broadcast %15 : vector<32x1xf32> to vector<32x128xf32>
    %29 = arith.addf %27, %28 : vector<32x128xf32>
    %30 = arith.addf %29, %11 : vector<32x128xf32>
    %cst_25 = arith.constant 0.707106769 : f32
    %31 = vector.broadcast %cst_25 : f32 to vector<32x128xf32>
    %32 = arith.mulf %30, %31 : vector<32x128xf32>
    %cst_26 = arith.constant 0.000000e+00 : f32
    %33 = vector.broadcast %cst_26 : f32 to vector<32x128xf32>
    %34 = arith.maximumf %32, %33 : vector<32x128xf32>
    %c1 = arith.constant 1 : index
    %c0_27 = arith.constant 0 : index
    %c0_28 = arith.constant 0 : index
    %35 = vector.load %arg7[%c1, %c0_27, %c0_28] : memref<2x32x1xf32, #tpu.memory_space<vmem>>, vector<1x32x1xf32>
    %36 = vector.shape_cast %35 : vector<1x32x1xf32> to vector<32x1xf32>
    %c1_29 = arith.constant 1 : index
    %c0_30 = arith.constant 0 : index
    %c0_31 = arith.constant 0 : index
    %37 = vector.load %arg9[%c1_29, %c0_30, %c0_31] : memref<2x32x1xf32, #tpu.memory_space<vmem>>, vector<1x32x1xf32>
    %38 = vector.shape_cast %37 : vector<1x32x1xf32> to vector<32x1xf32>
    %c1_32 = arith.constant 1 : index
    %c0_33 = arith.constant 0 : index
    %c0_34 = arith.constant 0 : index
    %39 = vector.load %arg6[%c1_32, %c0_33, %c0_34] : memref<2x32x32xbf16, #tpu.memory_space<vmem>>, vector<1x32x32xbf16>
    %40 = vector.shape_cast %39 : vector<1x32x32xbf16> to vector<32x32xbf16>
    %41 = arith.truncf %34 : vector<32x128xf32> to vector<32x128xbf16>
    %cst_35 = arith.constant dense<0.000000e+00> : vector<32x128xf32>
    %42 = tpu.matmul %40, %41, %cst_35 {dimension_numbers = #tpu.dot_dimension_numbers<[1], [0], [0], [1], [0, 0, 1, 1], [], []>} : vector<32x32xbf16>, vector<32x128xbf16>, vector<32x128xf32> -> vector<32x128xf32>
    %43 = vector.broadcast %36 : vector<32x1xf32> to vector<32x128xf32>
    %44 = arith.addf %42, %43 : vector<32x128xf32>
    %cst_36 = arith.constant 0.000000e+00 : f32
    %45 = vector.broadcast %cst_36 : f32 to vector<32x128xf32>
    %46 = arith.maximumf %44, %45 : vector<32x128xf32>
    %c1_37 = arith.constant 1 : index
    %c0_38 = arith.constant 0 : index
    %c0_39 = arith.constant 0 : index
    %47 = vector.load %arg8[%c1_37, %c0_38, %c0_39] : memref<2x32x32xbf16, #tpu.memory_space<vmem>>, vector<1x32x32xbf16>
    %48 = vector.shape_cast %47 : vector<1x32x32xbf16> to vector<32x32xbf16>
    %49 = arith.truncf %46 : vector<32x128xf32> to vector<32x128xbf16>
    %cst_40 = arith.constant dense<0.000000e+00> : vector<32x128xf32>
    %50 = tpu.matmul %48, %49, %cst_40 {dimension_numbers = #tpu.dot_dimension_numbers<[1], [0], [0], [1], [0, 0, 1, 1], [], []>} : vector<32x32xbf16>, vector<32x128xbf16>, vector<32x128xf32> -> vector<32x128xf32>
    %51 = vector.broadcast %38 : vector<32x1xf32> to vector<32x128xf32>
    %52 = arith.addf %50, %51 : vector<32x128xf32>
    %53 = arith.addf %52, %34 : vector<32x128xf32>
    %cst_41 = arith.constant 0.707106769 : f32
    %54 = vector.broadcast %cst_41 : f32 to vector<32x128xf32>
    %55 = arith.mulf %53, %54 : vector<32x128xf32>
    %cst_42 = arith.constant 0.000000e+00 : f32
    %56 = vector.broadcast %cst_42 : f32 to vector<32x128xf32>
    %57 = arith.maximumf %55, %56 : vector<32x128xf32>
    %58 = tpu.concatenate %1, %2 in 0 : vector<8x128xf32>, vector<8x128xf32> -> vector<16x128xf32>
    %c0_43 = arith.constant 0 : index
    %c0_44 = arith.constant 0 : index
    %59 = vector.load %arg10[%c0_43, %c0_44] : memref<8x16xbf16, #tpu.memory_space<vmem>>, vector<8x16xbf16>
    %60 = arith.truncf %58 : vector<16x128xf32> to vector<16x128xbf16>
    %cst_45 = arith.constant dense<0.000000e+00> : vector<8x128xf32>
    %61 = tpu.matmul %59, %60, %cst_45 {dimension_numbers = #tpu.dot_dimension_numbers<[1], [0], [0], [1], [0, 0, 1, 1], [], []>} : vector<8x16xbf16>, vector<16x128xbf16>, vector<8x128xf32> -> vector<8x128xf32>
    %c0_46 = arith.constant 0 : index
    %c0_47 = arith.constant 0 : index
    %62 = vector.load %arg11[%c0_46, %c0_47] : memref<8x1xf32, #tpu.memory_space<vmem>>, vector<8x1xf32>
    %63 = vector.broadcast %62 : vector<8x1xf32> to vector<8x128xf32>
    %64 = arith.addf %61, %63 : vector<8x128xf32>
    %65 = tpu.iota {dimensions = array<i32: 0>} : vector<8x128xi32>
    %c0_i32 = arith.constant 0 : i32
    %66 = vector.broadcast %c0_i32 : i32 to vector<8x128xi32>
    %67 = arith.cmpi eq, %65, %66 : vector<8x128xi32>
    %cst_48 = arith.constant 0.000000e+00 : f32
    %68 = vector.broadcast %cst_48 : f32 to vector<8x128xf32>
    %69 = arith.select %67, %64, %68 : vector<8x128xi1>, vector<8x128xf32>
    %cst_49 = arith.constant dense<0.000000e+00> : vector<128xf32>
    %70 = vector.multi_reduction <add>, %69, %cst_49 [0] : vector<8x128xf32> to vector<128xf32>
    %71 = vector.shape_cast %70 : vector<128xf32> to vector<1x128xf32>
    %c1_i32 = arith.constant 1 : i32
    %72 = vector.broadcast %c1_i32 : i32 to vector<8x128xi32>
    %73 = arith.cmpi eq, %65, %72 : vector<8x128xi32>
    %cst_50 = arith.constant 0.000000e+00 : f32
    %74 = vector.broadcast %cst_50 : f32 to vector<8x128xf32>
    %75 = arith.select %73, %64, %74 : vector<8x128xi1>, vector<8x128xf32>
    %cst_51 = arith.constant dense<0.000000e+00> : vector<128xf32>
    %76 = vector.multi_reduction <add>, %75, %cst_51 [0] : vector<8x128xf32> to vector<128xf32>
    %77 = vector.shape_cast %76 : vector<128xf32> to vector<1x128xf32>
    %cst_52 = arith.constant dense<0.000000e+00> : vector<128xf32>
    %78 = vector.multi_reduction <add>, %57, %cst_52 [0] : vector<32x128xf32> to vector<128xf32>
    %79 = vector.shape_cast %78 : vector<128xf32> to vector<1x128xf32>
    %cst_53 = arith.constant 3.200000e+01 : f32
    %80 = vector.broadcast %cst_53 : f32 to vector<1x128xf32>
    %81 = arith.divf %79, %80 : vector<1x128xf32>
    %82 = vector.broadcast %81 : vector<1x128xf32> to vector<32x128xf32>
    %83 = arith.subf %57, %82 : vector<32x128xf32>
    %84 = arith.mulf %83, %83 : vector<32x128xf32>
    %cst_54 = arith.constant dense<0.000000e+00> : vector<128xf32>
    %85 = vector.multi_reduction <add>, %84, %cst_54 [0] : vector<32x128xf32> to vector<128xf32>
    %86 = vector.shape_cast %85 : vector<128xf32> to vector<1x128xf32>
    %cst_55 = arith.constant 0.0322580636 : f32
    %87 = vector.broadcast %cst_55 : f32 to vector<1x128xf32>
    %88 = arith.mulf %86, %87 : vector<1x128xf32>
    %89 = math.sqrt %88 : vector<1x128xf32>
    %cst_56 = arith.constant 9.99999997E-7 : f32
    %90 = vector.broadcast %cst_56 : f32 to vector<1x128xf32>
    %91 = arith.addf %89, %90 : vector<1x128xf32>
    %92 = tpu.reciprocal %91 {approx = true} : vector<1x128xf32> -> vector<1x128xf32>
    %93 = arith.mulf %92, %71 : vector<1x128xf32>
    %94 = vector.broadcast %93 : vector<1x128xf32> to vector<32x128xf32>
    %95 = arith.mulf %83, %94 : vector<32x128xf32>
    %96 = vector.broadcast %77 : vector<1x128xf32> to vector<32x128xf32>
    %97 = arith.addf %95, %96 : vector<32x128xf32>
    %cst_57 = arith.constant 0.000000e+00 : f32
    %98 = vector.broadcast %cst_57 : f32 to vector<32x128xf32>
    %99 = arith.maximumf %97, %98 : vector<32x128xf32>
    %c0_58 = arith.constant 0 : index
    %c0_59 = arith.constant 0 : index
    %c0_60 = arith.constant 0 : index
    %100 = vector.load %arg13[%c0_58, %c0_59, %c0_60] : memref<1x32x1xf32, #tpu.memory_space<vmem>>, vector<1x32x1xf32>
    %101 = vector.shape_cast %100 : vector<1x32x1xf32> to vector<32x1xf32>
    %c0_61 = arith.constant 0 : index
    %c0_62 = arith.constant 0 : index
    %c0_63 = arith.constant 0 : index
    %102 = vector.load %arg15[%c0_61, %c0_62, %c0_63] : memref<1x32x1xf32, #tpu.memory_space<vmem>>, vector<1x32x1xf32>
    %103 = vector.shape_cast %102 : vector<1x32x1xf32> to vector<32x1xf32>
    %c0_64 = arith.constant 0 : index
    %c0_65 = arith.constant 0 : index
    %c0_66 = arith.constant 0 : index
    %104 = vector.load %arg12[%c0_64, %c0_65, %c0_66] : memref<1x32x32xbf16, #tpu.memory_space<vmem>>, vector<1x32x32xbf16>
    %105 = vector.shape_cast %104 : vector<1x32x32xbf16> to vector<32x32xbf16>
    %106 = arith.truncf %99 : vector<32x128xf32> to vector<32x128xbf16>
    %cst_67 = arith.constant dense<0.000000e+00> : vector<32x128xf32>
    %107 = tpu.matmul %105, %106, %cst_67 {dimension_numbers = #tpu.dot_dimension_numbers<[1], [0], [0], [1], [0, 0, 1, 1], [], []>} : vector<32x32xbf16>, vector<32x128xbf16>, vector<32x128xf32> -> vector<32x128xf32>
    %108 = vector.broadcast %101 : vector<32x1xf32> to vector<32x128xf32>
    %109 = arith.addf %107, %108 : vector<32x128xf32>
    %cst_68 = arith.constant 0.000000e+00 : f32
    %110 = vector.broadcast %cst_68 : f32 to vector<32x128xf32>
    %111 = arith.maximumf %109, %110 : vector<32x128xf32>
    %c0_69 = arith.constant 0 : index
    %c0_70 = arith.constant 0 : index
    %c0_71 = arith.constant 0 : index
    %112 = vector.load %arg14[%c0_69, %c0_70, %c0_71] : memref<1x32x32xbf16, #tpu.memory_space<vmem>>, vector<1x32x32xbf16>
    %113 = vector.shape_cast %112 : vector<1x32x32xbf16> to vector<32x32xbf16>
    %114 = arith.truncf %111 : vector<32x128xf32> to vector<32x128xbf16>
    %cst_72 = arith.constant dense<0.000000e+00> : vector<32x128xf32>
    %115 = tpu.matmul %113, %114, %cst_72 {dimension_numbers = #tpu.dot_dimension_numbers<[1], [0], [0], [1], [0, 0, 1, 1], [], []>} : vector<32x32xbf16>, vector<32x128xbf16>, vector<32x128xf32> -> vector<32x128xf32>
    %116 = vector.broadcast %103 : vector<32x1xf32> to vector<32x128xf32>
    %117 = arith.addf %115, %116 : vector<32x128xf32>
    %118 = arith.addf %117, %97 : vector<32x128xf32>
    %cst_73 = arith.constant 0.707106769 : f32
    %119 = vector.broadcast %cst_73 : f32 to vector<32x128xf32>
    %120 = arith.mulf %118, %119 : vector<32x128xf32>
    %cst_74 = arith.constant 0.000000e+00 : f32
    %121 = vector.broadcast %cst_74 : f32 to vector<32x128xf32>
    %122 = arith.maximumf %120, %121 : vector<32x128xf32>
    %c0_75 = arith.constant 0 : index
    %c0_76 = arith.constant 0 : index
    %123 = vector.load %arg16[%c0_75, %c0_76] : memref<8x32xbf16, #tpu.memory_space<vmem>>, vector<8x32xbf16>
    %124 = arith.truncf %122 : vector<32x128xf32> to vector<32x128xbf16>
    %cst_77 = arith.constant dense<0.000000e+00> : vector<8x128xf32>
    %125 = tpu.matmul %123, %124, %cst_77 {dimension_numbers = #tpu.dot_dimension_numbers<[1], [0], [0], [1], [0, 0, 1, 1], [], []>} : vector<8x32xbf16>, vector<32x128xbf16>, vector<8x128xf32> -> vector<8x128xf32>
    %c0_78 = arith.constant 0 : index
    %c0_79 = arith.constant 0 : index
    %126 = vector.load %arg17[%c0_78, %c0_79] : memref<8x1xf32, #tpu.memory_space<vmem>>, vector<8x1xf32>
    %127 = vector.broadcast %126 : vector<8x1xf32> to vector<8x128xf32>
    %128 = arith.addf %125, %127 : vector<8x128xf32>
    %129 = tpu.iota {dimensions = array<i32: 0>} : vector<8x128xi32>
    %c3_i32 = arith.constant 3 : i32
    %130 = vector.broadcast %c3_i32 : i32 to vector<8x128xi32>
    %131 = arith.cmpi eq, %129, %130 : vector<8x128xi32>
    %132 = arith.negf %128 : vector<8x128xf32>
    %133 = math.exp %132 : vector<8x128xf32>
    %cst_80 = arith.constant 1.000000e+00 : f32
    %134 = vector.broadcast %cst_80 : f32 to vector<8x128xf32>
    %135 = arith.addf %134, %133 : vector<8x128xf32>
    %136 = arith.divf %134, %135 : vector<8x128xf32>
    %137 = arith.select %131, %136, %128 : vector<8x128xi1>, vector<8x128xf32>
    %c0_81 = arith.constant 0 : index
    %c0_82 = arith.constant 0 : index
    %138 = vector.load %arg18[%c0_81, %c0_82] : memref<8x128xf32, #tpu.memory_space<vmem>>, vector<8x128xf32>
    tpu.vector_store %arg18[%c0_81, %c0_82], %137 {strides = array<i32>} : memref<8x128xf32, #tpu.memory_space<vmem>>, vector<8x128xf32>,
    return
  }
  func.func @transform_0(%arg0: i32) -> (i32, i32) {
    %c0_i32 = arith.constant 0 : i32
    %c0_i32_0 = arith.constant 0 : i32
    return %c0_i32, %arg0 : i32, i32
  }
  func.func @transform_1(%arg0: i32) -> (i32, i32) {
    %c0_i32 = arith.constant 0 : i32
    %c0_i32_0 = arith.constant 0 : i32
    return %c0_i32, %arg0 : i32, i32
  }
  func.func @transform_2(%arg0: i32) -> (i32, i32) {
    %c0_i32 = arith.constant 0 : i32
    %c0_i32_0 = arith.constant 0 : i32
    return %c0_i32, %arg0 : i32, i32
  }
  func.func @transform_3(%arg0: i32) -> (i32, i32) {
    %c0_i32 = arith.constant 0 : i32
    %c0_i32_0 = arith.constant 0 : i32
    %c0_i32_1 = arith.constant 0 : i32
    return %c0_i32, %c0_i32_0 : i32, i32
  }
  func.func @transform_4(%arg0: i32) -> (i32, i32) {
    %c0_i32 = arith.constant 0 : i32
    %c0_i32_0 = arith.constant 0 : i32
    %c0_i32_1 = arith.constant 0 : i32
    return %c0_i32, %c0_i32_0 : i32, i32
  }
  func.func @transform_5(%arg0: i32) -> (i32, i32, i32) {
    %c0_i32 = arith.constant 0 : i32
    %c0_i32_0 = arith.constant 0 : i32
    %c0_i32_1 = arith.constant 0 : i32
    %c0_i32_2 = arith.constant 0 : i32
    return %c0_i32, %c0_i32_0, %c0_i32_1 : i32, i32, i32
  }
  func.func @transform_6(%arg0: i32) -> (i32, i32, i32) {
    %c0_i32 = arith.constant 0 : i32
    %c0_i32_0 = arith.constant 0 : i32
    %c0_i32_1 = arith.constant 0 : i32
    %c0_i32_2 = arith.constant 0 : i32
    return %c0_i32, %c0_i32_0, %c0_i32_1 : i32, i32, i32
  }
  func.func @transform_7(%arg0: i32) -> (i32, i32, i32) {
    %c0_i32 = arith.constant 0 : i32
    %c0_i32_0 = arith.constant 0 : i32
    %c0_i32_1 = arith.constant 0 : i32
    %c0_i32_2 = arith.constant 0 : i32
    return %c0_i32, %c0_i32_0, %c0_i32_1 : i32, i32, i32
  }
  func.func @transform_8(%arg0: i32) -> (i32, i32, i32) {
    %c0_i32 = arith.constant 0 : i32
    %c0_i32_0 = arith.constant 0 : i32
    %c0_i32_1 = arith.constant 0 : i32
    %c0_i32_2 = arith.constant 0 : i32
    return %c0_i32, %c0_i32_0, %c0_i32_1 : i32, i32, i32
  }
  func.func @transform_9(%arg0: i32) -> (i32, i32) {
    %c0_i32 = arith.constant 0 : i32
    %c0_i32_0 = arith.constant 0 : i32
    %c0_i32_1 = arith.constant 0 : i32
    return %c0_i32, %c0_i32_0 : i32, i32
  }
  func.func @transform_10(%arg0: i32) -> (i32, i32) {
    %c0_i32 = arith.constant 0 : i32
    %c0_i32_0 = arith.constant 0 : i32
    %c0_i32_1 = arith.constant 0 : i32
    return %c0_i32, %c0_i32_0 : i32, i32
  }
  func.func @transform_11(%arg0: i32) -> (i32, i32, i32) {
    %c0_i32 = arith.constant 0 : i32
    %c0_i32_0 = arith.constant 0 : i32
    %c0_i32_1 = arith.constant 0 : i32
    %c0_i32_2 = arith.constant 0 : i32
    return %c0_i32, %c0_i32_0, %c0_i32_1 : i32, i32, i32
  }
  func.func @transform_12(%arg0: i32) -> (i32, i32, i32) {
    %c0_i32 = arith.constant 0 : i32
    %c0_i32_0 = arith.constant 0 : i32
    %c0_i32_1 = arith.constant 0 : i32
    %c0_i32_2 = arith.constant 0 : i32
    return %c0_i32, %c0_i32_0, %c0_i32_1 : i32, i32, i32
  }
  func.func @transform_13(%arg0: i32) -> (i32, i32, i32) {
    %c0_i32 = arith.constant 0 : i32
    %c0_i32_0 = arith.constant 0 : i32
    %c0_i32_1 = arith.constant 0 : i32
    %c0_i32_2 = arith.constant 0 : i32
    return %c0_i32, %c0_i32_0, %c0_i32_1 : i32, i32, i32
  }
  func.func @transform_14(%arg0: i32) -> (i32, i32, i32) {
    %c0_i32 = arith.constant 0 : i32
    %c0_i32_0 = arith.constant 0 : i32
    %c0_i32_1 = arith.constant 0 : i32
    %c0_i32_2 = arith.constant 0 : i32
    return %c0_i32, %c0_i32_0, %c0_i32_1 : i32, i32, i32
  }
  func.func @transform_15(%arg0: i32) -> (i32, i32) {
    %c0_i32 = arith.constant 0 : i32
    %c0_i32_0 = arith.constant 0 : i32
    %c0_i32_1 = arith.constant 0 : i32
    return %c0_i32, %c0_i32_0 : i32, i32
  }
  func.func @transform_16(%arg0: i32) -> (i32, i32) {
    %c0_i32 = arith.constant 0 : i32
    %c0_i32_0 = arith.constant 0 : i32
    %c0_i32_1 = arith.constant 0 : i32
    return %c0_i32, %c0_i32_0 : i32, i32
  }
  func.func @transform_17(%arg0: i32) -> (i32, i32) {
    %c0_i32 = arith.constant 0 : i32
    %c0_i32_0 = arith.constant 0 : i32
    return %c0_i32, %arg0 : i32, i32
  }
}

</mosaic_0001>

<bundles_post_ra>
// kernel: tpu_custom_call.1
= control target key start
LH: loop header
LB: loop body
LE: loop exit
PB: predicated region body
PF: predicated region fallthrough
CT: control target
= control target key end

     0   :  { %s2330_s0 = inlined_call_operand.vmem [shape: f32[16,384], index: 0, kind: input, shape index: {}]   ;;  %s2331_s1 = inlined_call_operand.vmem [shape: f32[8,384], index: 1, kind: input, shape index: {}]   ;;  %s2332_s2 = inlined_call_operand.vmem [shape: f32[8,384], index: 2, kind: input, shape index: {}]   ;;  %s2333_s3 = inlined_call_operand.vmem [shape: bf16[32,32], index: 3, kind: input, shape index: {}]   ;;  %s2334_s4 = inlined_call_operand.vmem [shape: f32[32,1], index: 4, kind: input, shape index: {}]   ;;  %s2335_s5 = inlined_call_operand.vmem [shape: bf16[2,32,32], index: 5, kind: input, shape index: {}]   ;;  %s2336_s6 = inlined_call_operand.vmem [shape: f32[2,32,1], index: 6, kind: input, shape index: {}]   ;;  %s2337_s7 = inlined_call_operand.vmem [shape: bf16[2,32,32], index: 7, kind: input, shape index: {}]   ;;  %s2338_s8 = inlined_call_operand.vmem [shape: f32[2,32,1], index: 8, kind: input, shape index: {}]   ;;  %s2339_s9 = inlined_call_operand.vmem [shape: bf16[8,16], index: 9, kind: input, shape index: {}]   ;;  %s2340_s10 = inlined_call_operand.vmem [shape: f32[8,1], index: 10, kind: input, shape index: {}]   ;;  %s2341_s11 = inlined_call_operand.vmem [shape: bf16[1,32,32], index: 11, kind: input, shape index: {}]   ;;  %s2342_s12 = inlined_call_operand.vmem [shape: f32[1,32,1], index: 12, kind: input, shape index: {}]   ;;  %s2343_s13 = inlined_call_operand.vmem [shape: bf16[1,32,32], index: 13, kind: input, shape index: {}]   ;;  %s2344_s14 = inlined_call_operand.vmem [shape: f32[1,32,1], index: 14, kind: input, shape index: {}]   ;;  %s2345_s15 = inlined_call_operand.vmem [shape: bf16[8,32], index: 15, kind: input, shape index: {}]   ;;  %s2346_s16 = inlined_call_operand.vmem [shape: f32[8,1], index: 16, kind: input, shape index: {}]   ;;  %s2347_s17 = inlined_call_operand.hbm [shape: f32[8,384], index: 17, kind: output, shape index: {}]  }
   0x1   :  { %2356 = sst [smem:[#allocation13_spill]] %s2330_s0 }
   0x2   :  { %2357 = sst [smem:[#allocation14_spill]] %s2331_s1 }
   0x3   :  { %2358 = sst [smem:[#allocation15_spill]] %s2347_s17 }
   0x4   :  { %22 = vsyncpa [#allocation4], 0 }
   0x5   :  { %24 = vsyncpa [#allocation4 + $0x1], 0  ;;  %s2018_s24 = smov 0   ;;  %s2020_s25 = smov 0  }
   0x6   :  { %s2022_s26 = smov 0   ;;  %s2024_s27 = smov 0  }
   0x7 LB: > { %2359 = sst [smem:[#allocation6_spill]] %s1910_s24  ;;  %s2039_s28 = sadd.s32 4294967295, %s1922_s27   ;;  %s1922_s27 = sphi %s2024_s27, %s2374_s27   ;;  %s1918_s26 = sphi %s2022_s26, %s2377_s26   ;;  %s1914_s25 = sphi %s2020_s25, %s2376_s25   ;;  %s1910_s24 = sphi %s2018_s24, %s2375_s24  }
   0x8   : > { %2360 = sst [smem:[#allocation7_spill]] %s1914_s25  ;;  %s1630_s29 = sadd.s32 4294967294, %s1922_s27  }
   0x9   : > { %2361 = sst [smem:[#allocation8_spill]] %s1918_s26  ;;  %s2043_s0 = sadd.s32 1, %s1922_s27  }
   0xa   : > { %2362 = sst [smem:[#allocation9_spill]] %s1922_s27  ;;  %s37_s30 = sadd.s32 1, %s1918_s26 }
   0xb   : > { %2363 = sst [smem:[#allocation10_spill]] %s2043_s0  ;;  %s34_s18 = ssub.s32 %s1922_s27, %s2043_s0 }
   0xc   : > { %p44_p0 = scmp.ne.s32.totalorder %s1918_s26, %s1914_s25  ;;  %p35_p1 = scmp.eq.s32.totalorder %s34_s18, 0 }
   0xd   : > { %p45_p2 = scmp.eq.s32.totalorder %s1922_s27, 0  ;;  %p420_p3 = scmp.eq.s32.totalorder %s2039_s28, 2 }
   0xe   : > { %p425_p4 = scmp.ne.s32.totalorder %s1914_s25, %s1910_s24  ;;  %p426_p7 = scmp.eq.s32.totalorder %s1630_s29, 2 }
   0xf   : > { %s2055_s19 = scalar_select %p35_p1, %s1918_s26, %s37_s30  }
  0x10   : > { %p46_p5 = por %p45_p2, %p44_p0  ;;  %p2057_p6 = por %p420_p3, %p44_p0 }
  0x11   : > { %2364 = sst [smem:[#allocation11_spill]] %s2055_s19  ;;  %p2061_p8 = por %p426_p7, %p425_p4 }
  0x12   : > { %p1632_p9 = scmp.ge.s32.totalorder %s1922_s27, 3 }
  0x13   : > { %s2366_s20 = scalar_select %p2061_p8, 1, 0 }
  0x14   : > { %484 = sbr.rel (%p1632_p9) target bundleno = 38 (0x26), region = 72 }
  0x15   : > { %2367 = sst [smem:[#allocation12_spill]] %s2366_s20 }
  0x1b   : > { %487 = sbr.rel (!%p46_p5) target bundleno = 38 (0x26), region = 76  ;;  %s489_s21 = sand.u32 (%p46_p5), 1, %s1918_s26  }
  0x1c   : > { %s1634_s22 = sshll.u32 (%p46_p5), %s1922_s27, 3  ;;  %s1633_s23 = sshll.u32 (%p46_p5), %s489_s21, 4 }
  0x1d   : > { %s2368_s19 = sld [smem:[#allocation13_spill]] (%p46_p5)  ;;  %s491_s29 = scalar_lea.vmem (%p46_p5), [#allocation2], %s1633_s23 }
  0x23   : > { %s493_s0 = scalar_lea.vmem %s2368_s19, %s1634_s22 }
  0x24   : > { %v523_v0 = vld [vmem:[%s493_s0] sm:$0xff]  ;;  %v525_v1 = vld [vmem:[%s493_s0 + $0x18] sm:$0xff] }
  0x25   : > { %524 = vst [vmem:[%s491_s29] sm:$0xff] %v523_v0  ;;  %526 = vst [vmem:[%s491_s29 + $0x8] sm:$0xff] %v525_v1 }
  0x26 PF: > { %p1635_p10 = scmp.ge.s32.totalorder %s1922_s27, 1  ;;  %p545_p11 = scmp.lt.s32.totalorder %s1922_s27, 4 }
  0x28   : > { %p546_p12 = pnand %p1635_p10, %p545_p11 }
  0x29   : > { %s2074_s21 = sand.u32 (!%p546_p12), 1, %s1914_s25   ;;  %p611_p13 = scmp.lt.s32.totalorder (!%p546_p12), %s2039_s28, 2  ;;  %v1838_v2 = vld [vmem:[%s2333_s3] sm:$0xff] (!%p546_p12)   ;;  %vm664_vm0 = vcmask (!%p546_p12), 261120   ;;  %v632_v4 = vld [vmem:[%s2334_s4 + $0x10] sm:$0xff] (!%p546_p12)  ;;  %v1924_v7 = vmov (!%p546_p12), 0  }
  0x2a   : > { %549 = sbr.rel (%p546_p12) target bundleno = 2010 (0x7da), region = 122  ;;  %s1636_s19 = sshll.u32 (!%p546_p12), %s2074_s21, 4  ;;  %v630_v3 = vld [vmem:[%s2334_s4] sm:$0xff] (!%p546_p12)  ;;  %1728 = vmatprep.mubr.msk.bf16.mxu0 (!%p546_p12), %vm664_vm0, %v1838_v2  ;;  %1836 = vset.pattern.permute.xlu0 (!%p546_p12), %v1924_v7  ;;  %v631_v9 = vld [vmem:[%s2334_s4 + $0x8] sm:$0xff] (!%p546_p12)  ;;  %v633_v10 = vld [vmem:[%s2334_s4 + $0x18] sm:$0xff] (!%p546_p12)  ;;  %vm1926_vm1 = vmmov (!%p546_p12), 0  }
  0x2b   : > { %s554_s26 = scalar_lea.vmem (!%p546_p12), [#allocation2], %s1636_s19  ;;  %636 = vperm.xlu0 (!%p546_p12), %1836, %v630_v3   ;;  %1837 = vset.pattern.permute.xlu1 (!%p546_p12), %v1924_v7  ;;  %s2369_s19 = sld [smem:[#allocation14_spill]] (!%p546_p12)  ;;  %v724_v14 = vld [vmem:[%s2336_s6] sm:$0xff] (!%p546_p12)  ;;  %v1839_v15 = vld [vmem:[%s2333_s3 + $0x8] sm:$0xff] (!%p546_p12)   ;;  %v726_v17 = vld [vmem:[%s2336_s6 + $0x10] sm:$0xff] (!%p546_p12)  ;;  %vm1147_vm2 = vcmask (!%p546_p12), 130048  }
  0x2c   : > { %v620_v5 = vld [vmem:[%s554_s26] sm:$0xff] (!%p546_p12)  ;;  %v621_v6 = vld [vmem:[%s554_s26 + $0x8] sm:$0xff] (!%p546_p12)  ;;  %646 = vperm.xlu1 (!%p546_p12), %1837, %v632_v4   ;;  %s1688_s17 = sshll.u32 (!%p546_p12), %s2039_s28, 7  ;;  %s1528_s26 = scalar_lea.sflag (!%p546_p12), [#allocation4], %s2074_s21 }
  0x2d   : > { %v628_v8 = vpack.c.bf16 (!%p546_p12), %v621_v6, %v620_v5  ;;  %v725_v16 = vld [vmem:[%s2336_s6 + $0x8] sm:$0xff] (!%p546_p12)  ;;  %v727_v18 = vld [vmem:[%s2336_s6 + $0x18] sm:$0xff] (!%p546_p12)  ;;  %v728_v19 = vld [vmem:[%s2338_s8] sm:$0xff] (!%p546_p12) }
  0x2e   : > { %v729_v20 = vld [vmem:[%s2338_s8 + $0x8] sm:$0xff] (!%p546_p12)  ;;  %v730_v21 = vld [vmem:[%s2338_s8 + $0x10] sm:$0xff] (!%p546_p12)  ;;  %v731_v22 = vld [vmem:[%s2338_s8 + $0x18] sm:$0xff] (!%p546_p12) }
  0x2f   : > { %1724 = vmatprep.subr.bf16.mxu0 (!%p546_p12), %v628_v8  ;;  %641 = vperm.xlu0 (!%p546_p12), %1836, %v631_v9   ;;  %v1652_v23 = vld [vmem:[%s2336_s6 + $0x20] sm:$0xff] (!%p546_p12)  ;;  %v1653_v24 = vld [vmem:[%s2336_s6 + $0x28] sm:$0xff] (!%p546_p12)  ;;  %v1654_v25 = vld [vmem:[%s2336_s6 + $0x30] sm:$0xff] (!%p546_p12) }
  0x30   : > { %1725 = vmatpush3.bf16.msra.mxu0 (!%p546_p12), %v628_v8  ;;  %651 = vperm.xlu1 (!%p546_p12), %1837, %v633_v10   ;;  %v1655_v26 = vld [vmem:[%s2336_s6 + $0x38] sm:$0xff] (!%p546_p12)  ;;  %v1656_v27 = vld [vmem:[%s2338_s8 + $0x20] sm:$0xff] (!%p546_p12)  ;;  %v1657_v28 = vld [vmem:[%s2338_s8 + $0x28] sm:$0xff] (!%p546_p12) }
  0x31   : > { %s612_s25 = scalar_select %p611_p13, %s2039_s28, 2  ;;  %v1658_v29 = vld [vmem:[%s2338_s8 + $0x30] sm:$0xff]  ;;  %v1659_v30 = vld [vmem:[%s2338_s8 + $0x38] sm:$0xff]  ;;  %v1141_v31 = vld [vmem:[%s2340_s10] sm:$0xff] }
  0x32   : > { %v1260_v32 = vld [vmem:[%s2342_s12] sm:$0xff]  ;;  %v1261_v33 = vld [vmem:[%s2342_s12 + $0x8] sm:$0xff]  ;;  %v1262_v34 = vld [vmem:[%s2342_s12 + $0x10] sm:$0xff]  ;;  %s1927_s28 = smov [#allocation3]  }
  0x33   : > { %s1638_s0 = sshll.u32 %s612_s25, 3  ;;  %740 = vperm.xlu0 %1836, %v724_v14   ;;  %v1263_v35 = vld [vmem:[%s2342_s12 + $0x18] sm:$0xff]  ;;  %v1264_v36 = vld [vmem:[%s2344_s14] sm:$0xff]  ;;  %v1265_v37 = vld [vmem:[%s2344_s14 + $0x8] sm:$0xff]  ;;  %s1864_s22 = sshll.u32 %s1927_s28, 4  ;;  %s1865_s22 = int_to_ptr.vmem [resolvable:$false] %s1864_s22 }
  0x34   : > { %s614_s29 = scalar_lea.vmem %s2369_s19, %s1638_s0  ;;  %s618_s24 = scalar_lea.vmem %s2332_s2, %s1638_s0  ;;  %745 = vperm.xlu1 %1837, %v725_v16   ;;  %v1266_v38 = vld [vmem:[%s2344_s14 + $0x10] sm:$0xff]  ;;  %v1267_v39 = vld [vmem:[%s2344_s14 + $0x18] sm:$0xff]  ;;  %v1469_v40 = vld [vmem:[%s2346_s16] sm:$0xff] }
  0x35   : > { %v622_v11 = vld [vmem:[%s614_s29] sm:$0xff]  ;;  %v1841_v60 = vld [vmem:[%s2335_s5 + $0x8] sm:$0xff]   ;;  %s1637_s0 = sshll.u32 %s2074_s21, 3  ;;  %s2370_s19 = sld [smem:[#allocation15_spill]] }
  0x36   : > { %v623_v12 = vld [vmem:[%s618_s24] sm:$0xff]  ;;  %s610_s24 = scalar_lea.vmem [#allocation3], %s1637_s0  ;;  %s1866_s23 = scalar_lea.vmem %s1865_s22, 256 }
  0x37   : > { %v2101_v13 = vpack.c.bf16 %v623_v12, %v622_v11  ;;  %750 = vperm.xlu0 %1836, %v726_v17   ;;  %v1840_v41 = vld [vmem:[%s2335_s5] sm:$0xff]   ;;  %v1843_v17 = vld [vmem:[%s2337_s7 + $0x8] sm:$0xff]   ;;  %s1541_s27 = sshll.u32 %s610_s24, 4  ;;  %s2289_s27 = int_to_ptr.vmem [resolvable:$true] %s1541_s27 }
  0x38   : > { %755 = vperm.xlu1 %1837, %v727_v18   ;;  %1736 = vmatprep.mubr.msk.bf16.mxu1 %vm664_vm0, %v1840_v41  ;;  %v1842_v61 = vld [vmem:[%s2337_s7] sm:$0xff]   ;;  %v1844_v18 = vld [vmem:[%s2335_s5 + $0x10] sm:$0xff]   ;;  %s1860_s25 = scalar_lea.vmem %s2289_s27, 128  ;;  %p1867_p3 = scmp.lt.s32.totalorder %s2289_s27, %s1865_s22 }
  0x39   : > { %1726 = vmatprep.subr.bf16.mxu0 %v2101_v13  ;;  %p1861_p0 = scmp.ne.s32.totalorder %s2289_s27, %s1860_s25  ;;  %p1868_p4 = scmp.lt.s32.totalorder %s1866_s23, %s1860_s25 }
  0x3a   : > { %1727 = vmatpush3.bf16.msra.mxu0 %v2101_v13 }
  0x3b   : > { %835 = vperm.xlu0 %1836, %v728_v19   ;;  %s2287_s29 = scalar_lea.hbm %s2370_s19, %s1688_s17  ;;  %p1862_p1 = pnand %p1861_p0, %p2057_p6 }
  0x3c   : > { %840 = vperm.xlu1 %1837, %v729_v20   ;;  %p1869_p5 = por %p1868_p4, %p1867_p3 }
  0x3d   : > { %1729 = vmatmul.mubr.msk.bf16.vlgmr.msra.gmra.mrb[0].mxu0 %vm664_vm0, %v1839_v15  ;;  %p1863_p2 = pneg %p1862_p1 }
  0x3e   : > { %1744 = vmatprep.mubr.msk.bf16.mxu0 %vm664_vm0, %v1842_v61 }
  0x3f   : > { %845 = vperm.xlu0 %1836, %v730_v21   ;;  %p1870_p7 = pnand %p1869_p5, %p1863_p2 }
  0x40   : > { %850 = vperm.xlu1 %1837, %v731_v22  }
  0x43   : > { %949 = vperm.xlu0 %1836, %v1652_v23  }
  0x44   : > { %954 = vperm.xlu1 %1837, %v1653_v24  }
  0x47   : > { %959 = vperm.xlu0 %1836, %v1654_v25  }
  0x48   : > { %964 = vperm.xlu1 %1837, %v1655_v26  }
  0x4b   : > { %1045 = vperm.xlu0 %1836, %v1656_v27  }
  0x4c   : > { %1050 = vperm.xlu1 %1837, %v1657_v28  }
  0x4f   : > { %1055 = vperm.xlu0 %1836, %v1658_v29  }
  0x50   : > { %1060 = vperm.xlu1 %1837, %v1659_v30  }
  0x53   : > { %1144 = vperm.xlu0 %1836, %v1141_v31  }
  0x54   : > { %1276 = vperm.xlu1 %1837, %v1260_v32  }
  0x57   : > { %1281 = vperm.xlu0 %1836, %v1261_v33  }
  0x58   : > { %1286 = vperm.xlu1 %1837, %v1262_v34  }
  0x5b   : > { %1291 = vperm.xlu0 %1836, %v1263_v35  }
  0x5c   : > { %1371 = vperm.xlu1 %1837, %v1264_v36  }
  0x5f   : > { %1376 = vperm.xlu0 %1836, %v1265_v37  }
  0x60   : > { %1381 = vperm.xlu1 %1837, %v1266_v38  }
  0x63   : > { %1386 = vperm.xlu0 %1836, %v1267_v39  }
  0x64   : > { %1472 = vperm.xlu1 %1837, %v1469_v40  }
  0xaa   : > { %v637_v43 = vpop.permute.xlu0 %636 }
  0xab   : > { %v647_v42 = vpop.permute.xlu1 %646 }
  0xae   : > { %v642_v49 = vpop.permute.xlu0 %641 }
  0xaf   : > { %v652_v46 = vpop.permute.xlu1 %651 }
  0xb2   : > { %v741_v62 = vpop.permute.xlu0 %740 }
  0xb3   : > { %v746_v63 = vpop.permute.xlu1 %745 }
  0xb6   : > { %v751_v0 = vpop.permute.xlu0 %750 }
  0xb7   : > { %v756_v4 = vpop.permute.xlu1 %755 }
  0xba   : > { %v836_v19 = vpop.permute.xlu0 %835 }
  0xbb   : > { %v841_v20 = vpop.permute.xlu1 %840 }
  0xbe   : > { %v846_v21 = vpop.permute.xlu0 %845 }
  0xbf   : > { %v851_v25 = vpop.permute.xlu1 %850 }
 0x110   : > { %v1730_v44 = vpop.f32.mrb[0].mxu0 }
 0x111   : > { %v705_v45 = vpop.f32.mrb[1].mxu0  ;;  %v714_v52 = vadd.f32 %v1730_v44, %v647_v42 }
 0x112   : > { %v706_v47 = vadd.f32 %v705_v45, %v637_v43  ;;  %v1731_v48 = vpop.f32.mrb[2].mxu0  ;;  %v1845_v45 = vld [vmem:[%s2335_s5 + $0x18] sm:$0xff]  }
 0x113   : > { %v717_v50 = vadd.f32 %v1731_v48, %v652_v46  ;;  %v708_v51 = vpop.f32.mrb[3].mxu0  ;;  %v722_v57 = vmax.f32 %v714_v52, 0.0  ;;  %v1925_v46 = vmov 0.0   ;;  %v1846_v48 = vld [vmem:[%s2337_s7 + $0x10] sm:$0xff]  }
 0x114   : > { %v709_v53 = vadd.f32 %v708_v51, %v642_v49  ;;  %v720_v54 = vmax.f32 %v706_v47, 0.0  ;;  %v1140_v47 = vld [vmem:[%s2339_s9] sm:$0xf]  ;;  %v950_v49 = vpop.permute.xlu0 %949 }
 0x115   : > { %v723_v55 = vmax.f32 %v717_v50, 0.0  ;;  %v955_v50 = vpop.permute.xlu1 %954 }
 0x116   : > { %v721_v56 = vmax.f32 %v709_v53, 0.0 }
 0x117   : > { %v737_v59 = vpack.c.bf16 %v723_v55, %v722_v57 }
 0x118   : > { %v736_v58 = vpack.c.bf16 %v721_v56, %v720_v54  ;;  %v960_v51 = vpop.permute.xlu0 %959 }
 0x11a   : > { %1732 = vmatprep.subr.bf16.mxu1 %v736_v58 }
 0x11b   : > { %1733 = vmatpush3.bf16.msra.mxu1 %v736_v58 }
 0x11c   : > { %1734 = vmatprep.subr.bf16.mxu1 %v737_v59 }
 0x11f   : > { %1735 = vmatpush3.bf16.msra.mxu1 %v737_v59 }
 0x122   : > { %1737 = vmatmul.mubr.msk.bf16.vlgmr.msra.gmra.mrb[0].mxu1 %vm664_vm0, %v1841_v60 }
 0x123   : > { %1752 = vmatprep.mubr.msk.bf16.mxu1 %vm664_vm0, %v1844_v18 }
 0x1f5   : > { %v1738_v1 = vpop.f32.mrb[0].mxu1 }
 0x1f6   : > { %v817_v2 = vadd.f32 %v1738_v1, %v751_v0  ;;  %v808_v3 = vpop.f32.mrb[1].mxu1 }
 0x1f7   : > { %v809_v5 = vadd.f32 %v808_v3, %v741_v62  ;;  %v1739_v6 = vpop.f32.mrb[2].mxu1 }
 0x1f8   : > { %v820_v7 = vadd.f32 %v1739_v6, %v756_v4  ;;  %v811_v8 = vpop.f32.mrb[3].mxu1  ;;  %v825_v10 = vmax.f32 %v817_v2, 0.0  ;;  %v1847_v6 = vld [vmem:[%s2337_s7 + $0x18] sm:$0xff]  }
 0x1f9   : > { %v812_v9 = vadd.f32 %v811_v8, %v746_v63  ;;  %v823_v12 = vmax.f32 %v809_v5, 0.0  ;;  %v1046_v8 = vpop.permute.xlu0 %1045 }
 0x1fa   : > { %v826_v11 = vmax.f32 %v820_v7, 0.0  ;;  %v1848_v7 = vld [vmem:[%s2341_s11] sm:$0xff]  }
 0x1fb   : > { %v824_v14 = vmax.f32 %v812_v9, 0.0 }
 0x1fc   : > { %v832_v15 = vpack.c.bf16 %v826_v11, %v825_v10 }
 0x1fd   : > { %v831_v16 = vpack.c.bf16 %v824_v14, %v823_v12  ;;  %v1056_v10 = vpop.permute.xlu0 %1055 }
 0x1ff   : > { %1740 = vmatprep.subr.bf16.mxu0 %v831_v16 }
 0x200   : > { %1741 = vmatpush3.bf16.msra.mxu0 %v831_v16 }
 0x201   : > { %1742 = vmatprep.subr.bf16.mxu0 %v832_v15 }
 0x204   : > { %1743 = vmatpush3.bf16.msra.mxu0 %v832_v15 }
 0x207   : > { %1745 = vmatmul.mubr.msk.bf16.vlgmr.msra.gmra.mrb[4].mxu0 %vm664_vm0, %v1843_v17 }
 0x208   : > { %1760 = vmatprep.mubr.msk.bf16.mxu0 %vm664_vm0, %v1846_v48 }
 0x2da   : > { %v1746_v22 = vpop.f32.mrb[4].mxu0 }
 0x2db   : > { %v912_v23 = vadd.f32 %v1746_v22, %v846_v21  ;;  %v903_v24 = vpop.f32.mrb[5].mxu0 }
 0x2dc   : > { %v904_v26 = vadd.f32 %v903_v24, %v836_v19  ;;  %v1747_v27 = vpop.f32.mrb[6].mxu0 }
 0x2dd   : > { %v915_v28 = vadd.f32 %v1747_v27, %v851_v25  ;;  %v906_v29 = vpop.f32.mrb[7].mxu0  ;;  %v920_v30 = vadd.f32 %v912_v23, %v722_v57 }
 0x2de   : > { %v918_v31 = vadd.f32 %v904_v26, %v720_v54  ;;  %v907_v32 = vadd.f32 %v906_v29, %v841_v20  ;;  %v965_v54 = vpop.permute.xlu1 %964 }
 0x2df   : > { %v921_v33 = vadd.f32 %v915_v28, %v723_v55  ;;  %v2211_v37 = vmul.f32 0.70710677, %v920_v30 }
 0x2e0   : > { %v2207_v34 = vmul.f32 0.70710677, %v918_v31  ;;  %v919_v35 = vadd.f32 %v907_v32, %v721_v56 }
 0x2e1   : > { %v2209_v36 = vmul.f32 0.70710677, %v921_v33  ;;  %v928_v42 = vmax.f32 %v2211_v37, 0.0 }
 0x2e2   : > { %v2213_v38 = vmul.f32 0.70710677, %v919_v35  ;;  %v926_v39 = vmax.f32 %v2207_v34, 0.0  ;;  %v1051_v9 = vpop.permute.xlu1 %1050 }
 0x2e3   : > { %v929_v40 = vmax.f32 %v2209_v36, 0.0 }
 0x2e4   : > { %v927_v41 = vmax.f32 %v2213_v38, 0.0 }
 0x2e5   : > { %v946_v44 = vpack.c.bf16 %v929_v40, %v928_v42 }
 0x2e6   : > { %v945_v43 = vpack.c.bf16 %v927_v41, %v926_v39  ;;  %v1061_v15 = vpop.permute.xlu1 %1060 }
 0x2e8   : > { %1748 = vmatprep.subr.bf16.mxu1 %v945_v43 }
 0x2e9   : > { %1749 = vmatpush3.bf16.msra.mxu1 %v945_v43 }
 0x2ea   : > { %1750 = vmatprep.subr.bf16.mxu1 %v946_v44 }
 0x2ed   : > { %1751 = vmatpush3.bf16.msra.mxu1 %v946_v44 }
 0x2ee   : > { %1764 = vmatprep.subr.bf16.mxu1 %v1925_v46 }
 0x2f0   : > { %1753 = vmatmul.mubr.msk.bf16.vlgmr.msra.gmra.mrb[4].mxu1 %vm664_vm0, %v1845_v45 }
 0x2f1   : > { %1765 = vmatpush3.bf16.msra.mxu1 %v2101_v13  ;;  %1766 = vmatprep.mubr.msk.bf16.mxu1 %vm1926_vm1, %v1925_v46 }
 0x2f8   : > { %1767 = vmatmul.mubr.msk.bf16.vlgmr.msra.gmra.mrb[8].mxu1 %vm1147_vm2, %v1140_v47 }
 0x3c3   : > { %v1754_v13 = vpop.f32.mrb[4].mxu1 }
 0x3c4   : > { %v1026_v52 = vadd.f32 %v1754_v13, %v960_v51  ;;  %v1017_v53 = vpop.f32.mrb[5].mxu1 }
 0x3c5   : > { %v1018_v55 = vadd.f32 %v1017_v53, %v950_v49  ;;  %v1755_v56 = vpop.f32.mrb[6].mxu1 }
 0x3c6   : > { %v1029_v57 = vadd.f32 %v1755_v56, %v965_v54  ;;  %v1020_v58 = vpop.f32.mrb[7].mxu1  ;;  %v1034_v60 = vmax.f32 %v1026_v52, 0.0 }
 0x3c7   : > { %v1021_v59 = vadd.f32 %v1020_v58, %v955_v50  ;;  %v1032_v62 = vmax.f32 %v1018_v55, 0.0 }
 0x3c8   : > { %v1035_v61 = vmax.f32 %v1029_v57, 0.0  ;;  %v1191_v57 = vlaneseq }
 0x3c9   : > { %v1033_v63 = vmax.f32 %v1021_v59, 0.0 }
 0x3ca   : > { %v1042_v0 = vpack.c.bf16 %v1035_v61, %v1034_v60  ;;  %v2256_v60 = vshrl.u32 %v1191_v57, 7 }
 0x3cb   : > { %v1041_v1 = vpack.c.bf16 %v1033_v63, %v1032_v62  ;;  %v2240_v2 = vpop.f32.mrb[8].mxu1  ;;  %v1145_v62 = vpop.permute.xlu0 %1144 }
 0x3cc   : > { %v1768_v3 = vpop.f32.mrb[9].mxu1  ;;  %vm1193_vm3 = vcmp.eq.s32.totalorder %v2256_v60, 0  ;;  %vm1201_vm4 = vcmp.eq.s32.totalorder %v2256_v60, 1  ;;  %vm1518_vm7 = vcmp.eq.s32.totalorder %v2256_v60, 3 }
 0x3cd   : > { %1756 = vmatprep.subr.bf16.mxu0 %v1041_v1  ;;  %v1188_v4 = vpop.f32.mrb[10].mxu1 }
 0x3ce   : > { %1757 = vmatpush3.bf16.msra.mxu0 %v1041_v1  ;;  %v1769_v5 = vpop.f32.mrb[11].mxu1 }
 0x3cf   : > { %1758 = vmatprep.subr.bf16.mxu0 %v1042_v0 }
 0x3d2   : > { %1759 = vmatpush3.bf16.msra.mxu0 %v1042_v0  ;;  %v1186_v0 = vadd.f32 %v2240_v2, %v1145_v62 }
 0x3d4   : > { %v1194_v1 = vsel %vm1193_vm3, %v1186_v0, 0.0  ;;  %v1202_v4 = vsel %vm1201_vm4, %v1186_v0, 0.0 }
 0x3d5   : > { %1761 = vmatmul.mubr.msk.bf16.vlgmr.msra.gmra.mrb[8].mxu0 %vm664_vm0, %v1847_v6  ;;  %v1195_v3 = vrot.slane %v1194_v1, 4  ;;  %v1203_v5 = vrot.slane %v1202_v4, 4 }
 0x3d6   : > { %1774 = vmatprep.mubr.msk.bf16.mxu0 %vm664_vm0, %v1848_v7 }
 0x3d7   : > { %v1196_v7 = vadd.f32 %v1195_v3, %v1194_v1 }
 0x4a8   : > { %v1762_v11 = vpop.f32.mrb[8].mxu0 }
 0x4a9   : > { %v1122_v12 = vadd.f32 %v1762_v11, %v1056_v10  ;;  %v1113_v14 = vpop.f32.mrb[9].mxu0  ;;  %v1204_v10 = vadd.f32 %v1203_v5, %v1202_v4 }
 0x4aa   : > { %v1114_v16 = vadd.f32 %v1113_v14, %v1046_v8  ;;  %v1763_v17 = vpop.f32.mrb[10].mxu0 }
 0x4ab   : > { %v1125_v18 = vadd.f32 %v1763_v17, %v1061_v15  ;;  %v1116_v19 = vpop.f32.mrb[11].mxu0  ;;  %v1130_v20 = vadd.f32 %v1122_v12, %v928_v42  ;;  %v1197_v12 = vrot.slane %v1196_v7, 2  ;;  %v1205_v15 = vrot.slane %v1204_v10, 2 }
 0x4ac   : > { %v1128_v21 = vadd.f32 %v1114_v16, %v926_v39  ;;  %v1117_v22 = vadd.f32 %v1116_v19, %v1051_v9 }
 0x4ad   : > { %v1131_v24 = vadd.f32 %v1125_v18, %v929_v40  ;;  %v1134_v26 = vmul.f32 0.70710677, %v1130_v20  ;;  %v1198_v16 = vadd.f32 %v1197_v12, %v1196_v7  ;;  %v1206_v17 = vadd.f32 %v1205_v15, %v1204_v10 }
 0x4ae   : > { %v1132_v23 = vmul.f32 0.70710677, %v1128_v21  ;;  %v1129_v25 = vadd.f32 %v1117_v22, %v927_v41 }
 0x4af   : > { %v1135_v29 = vmul.f32 0.70710677, %v1131_v24  ;;  %v1138_v31 = vmax.f32 %v1134_v26, 0.0  ;;  %v1199_v18 = vrot.slane %v1198_v16, 1  ;;  %v1207_v19 = vrot.slane %v1206_v17, 1 }
 0x4b0   : > { %v1133_v27 = vmul.f32 0.70710677, %v1129_v25  ;;  %v1136_v28 = vmax.f32 %v1132_v23, 0.0 }
 0x4b1   : > { %v1139_v33 = vmax.f32 %v1135_v29, 0.0  ;;  %v1200_v20 = vadd.f32 %v1199_v18, %v1198_v16  ;;  %v1208_v23 = vadd.f32 %v1207_v19, %v1206_v17 }
 0x4b2   : > { %v1137_v30 = vmax.f32 %v1133_v27, 0.0 }
 0x4b4   : > { %v1209_v32 = vadd.f32 %v1137_v30, %v1136_v28 }
 0x4b6   : > { %v1210_v35 = vadd.f32 %v1209_v32, %v1138_v31 }
 0x4b8   : > { %v1211_v37 = vadd.f32 %v1210_v35, %v1139_v33 }
 0x4ba   : > { %v1212_v34 = vrot.slane %v1211_v37, 4 }
 0x4bc   : > { %v1213_v39 = vadd.f32 %v1212_v34, %v1211_v37 }
 0x4be   : > { %v1214_v42 = vrot.slane %v1213_v39, 2 }
 0x4c0   : > { %v1215_v43 = vadd.f32 %v1214_v42, %v1213_v39  ;;  %v1849_v42 = vld [vmem:[%s2341_s11 + $0x8] sm:$0xff]  }
 0x4c2   : > { %v1216_v44 = vrot.slane %v1215_v43, 1 }
 0x4c4   : > { %v1217_v36 = vadd.f32 %v1216_v44, %v1215_v43  ;;  %v1850_v43 = vld [vmem:[%s2343_s13] sm:$0xff]   ;;  %v1277_v44 = vpop.permute.xlu1 %1276 }
 0x4c5   : > { %1782 = vmatprep.mubr.msk.bf16.mxu1 %vm664_vm0, %v1850_v43 }
 0x4c6   : > { %v1219_v40 = vmul.f32 0.03125, %v1217_v36  ;;  %v1282_v36 = vpop.permute.xlu0 %1281 }
 0x4c8   : > { %v1220_v45 = vsub.f32 %v1136_v28, %v1219_v40  ;;  %v1221_v38 = vsub.f32 %v1137_v30, %v1219_v40  ;;  %v1222_v41 = vsub.f32 %v1138_v31, %v1219_v40  ;;  %v1223_v47 = vsub.f32 %v1139_v33, %v1219_v40  ;;  %v1287_v40 = vpop.permute.xlu1 %1286 }
 0x4ca   : > { %v1224_v48 = vmul.f32 %v1220_v45, %v1220_v45  ;;  %v1225_v49 = vmul.f32 %v1221_v38, %v1221_v38  ;;  %v1226_v50 = vmul.f32 %v1222_v41, %v1222_v41  ;;  %v1227_v13 = vmul.f32 %v1223_v47, %v1223_v47 }
 0x4cc   : > { %v1228_v51 = vadd.f32 %v1225_v49, %v1224_v48 }
 0x4ce   : > { %v1229_v52 = vadd.f32 %v1228_v51, %v1226_v50 }
 0x4d0   : > { %v1230_v53 = vadd.f32 %v1229_v52, %v1227_v13 }
 0x4d2   : > { %v1231_v54 = vrot.slane %v1230_v53, 4 }
 0x4d4   : > { %v1232_v55 = vadd.f32 %v1231_v54, %v1230_v53 }
 0x4d6   : > { %v1233_v56 = vrot.slane %v1232_v55, 2 }
 0x4d8   : > { %v1234_v58 = vadd.f32 %v1233_v56, %v1232_v55 }
 0x4da   : > { %v1235_v59 = vrot.slane %v1234_v58, 1 }
 0x4dc   : > { %v1236_v61 = vadd.f32 %v1235_v59, %v1234_v58  ;;  %v1851_v58 = vld [vmem:[%s2343_s13 + $0x8] sm:$0xff]   ;;  %v1372_v59 = vpop.permute.xlu1 %1371 }
 0x4de   : > { %v1237_v63 = vmul.f32 0.032258064, %v1236_v61 }
 0x4e0   : > { %1852 = vrsqrt.f32 %v1237_v63  ;;  %vm1240_vm5 = vcmp.eq.f32.partialorder %v1237_v63, inf  ;;  %v1243_v9 = vand.u32 2147483648, %v1237_v63  ;;  %vm1242_vm6 = vcmp.eq.f32.partialorder %v1237_v63, 0.0  ;;  %v1382_v62 = vpop.permute.xlu1 %1381 }
 0x4ea   : > { %v1853_v6 = vpop.eup %1852 }
 0x4eb   : > { %v1239_v8 = vmul.f32 %v1853_v6, %v1237_v63 }
 0x4ed   : > { %v1241_v11 = vsel %vm1240_vm5, %v1237_v63, %v1239_v8 }
 0x4ee   : > { %v1244_v14 = vsel %vm1242_vm6, %v1243_v9, %v1241_v11 }
 0x4ef   : > { %v1245_v2 = vadd.f32 1e-06, %v1244_v14 }
 0x4f1   : > { %1854 = vrcp.f32 %v1245_v2 }
 0x4fb   : > { %v1855_v21 = vpop.eup %1854 }
 0x4fc   : > { %v1247_v22 = vmul.f32 %v1855_v21, %v1200_v20 }
 0x4fe   : > { %v1249_v24 = vmul.f32 %v1247_v22, %v1221_v38  ;;  %v1248_v25 = vmul.f32 %v1247_v22, %v1220_v45  ;;  %v1250_v26 = vmul.f32 %v1247_v22, %v1222_v41  ;;  %v1251_v27 = vmul.f32 %v1247_v22, %v1223_v47  ;;  %v1292_v47 = vpop.permute.xlu0 %1291 }
 0x500   : > { %v1252_v28 = vadd.f32 %v1248_v25, %v1208_v23  ;;  %v1253_v29 = vadd.f32 %v1249_v24, %v1208_v23  ;;  %v1254_v30 = vadd.f32 %v1250_v26, %v1208_v23  ;;  %v1255_v31 = vadd.f32 %v1251_v27, %v1208_v23  ;;  %v1466_v23 = vld [vmem:[%s2345_s15] sm:$0xf]  ;;  %v1473_v24 = vpop.permute.xlu1 %1472 }
 0x502   : > { %v1256_v32 = vmax.f32 %v1252_v28, 0.0  ;;  %v1257_v33 = vmax.f32 %v1253_v29, 0.0  ;;  %v1258_v35 = vmax.f32 %v1254_v30, 0.0  ;;  %v1259_v37 = vmax.f32 %v1255_v31, 0.0  ;;  %v1377_v61 = vpop.permute.xlu0 %1376 }
 0x504   : > { %v1272_v34 = vpack.c.bf16 %v1257_v33, %v1256_v32  ;;  %v1273_v39 = vpack.c.bf16 %v1259_v37, %v1258_v35 }
 0x506   : > { %1770 = vmatprep.subr.bf16.mxu0 %v1272_v34  ;;  %v1387_v3 = vpop.permute.xlu0 %1386 }
 0x507   : > { %1771 = vmatpush3.bf16.msra.mxu0 %v1272_v34 }
 0x508   : > { %1772 = vmatprep.subr.bf16.mxu0 %v1273_v39 }
 0x50b   : > { %1773 = vmatpush3.bf16.msra.mxu0 %v1273_v39 }
 0x50c   : > { %1786 = vmatprep.subr.bf16.mxu0 %v1925_v46 }
 0x50e   : > { %1775 = vmatmul.mubr.msk.bf16.vlgmr.msra.gmra.mrb[12].mxu0 %vm664_vm0, %v1849_v42 }
 0x50f   : > { %1790 = vmatprep.mubr.msk.bf16.mxu0 %vm1926_vm1, %v1925_v46 }
 0x5e1   : > { %v1776_v45 = vpop.f32.mrb[12].mxu0 }
 0x5e2   : > { %v1353_v38 = vadd.f32 %v1776_v45, %v1287_v40  ;;  %v1344_v41 = vpop.f32.mrb[13].mxu0 }
 0x5e3   : > { %v1345_v48 = vadd.f32 %v1344_v41, %v1277_v44  ;;  %v1777_v49 = vpop.f32.mrb[14].mxu0 }
 0x5e4   : > { %v1356_v50 = vadd.f32 %v1777_v49, %v1292_v47  ;;  %v1347_v51 = vpop.f32.mrb[15].mxu0  ;;  %v1361_v52 = vmax.f32 %v1353_v38, 0.0 }
 0x5e5   : > { %v1348_v13 = vadd.f32 %v1347_v51, %v1282_v36  ;;  %v1359_v54 = vmax.f32 %v1345_v48, 0.0 }
 0x5e6   : > { %v1362_v53 = vmax.f32 %v1356_v50, 0.0 }
 0x5e7   : > { %v1360_v55 = vmax.f32 %v1348_v13, 0.0 }
 0x5e8   : > { %v1368_v56 = vpack.c.bf16 %v1362_v53, %v1361_v52 }
 0x5e9   : > { %v1367_v57 = vpack.c.bf16 %v1360_v55, %v1359_v54 }
 0x5eb   : > { %1778 = vmatprep.subr.bf16.mxu1 %v1367_v57 }
 0x5ec   : > { %1779 = vmatpush3.bf16.msra.mxu1 %v1367_v57 }
 0x5ed   : > { %1780 = vmatprep.subr.bf16.mxu1 %v1368_v56 }
 0x5f0   : > { %1781 = vmatpush3.bf16.msra.mxu1 %v1368_v56 }
 0x5f3   : > { %1783 = vmatmul.mubr.msk.bf16.vlgmr.msra.gmra.mrb[12].mxu1 %vm664_vm0, %v1851_v58 }
 0x6c6   : > { %v1784_v63 = vpop.f32.mrb[12].mxu1 }
 0x6c7   : > { %v1448_v0 = vadd.f32 %v1784_v63, %v1382_v62  ;;  %v1439_v1 = vpop.f32.mrb[13].mxu1 }
 0x6c8   : > { %v1440_v4 = vadd.f32 %v1439_v1, %v1372_v59  ;;  %v1785_v5 = vpop.f32.mrb[14].mxu1 }
 0x6c9   : > { %v1456_v6 = vadd.f32 %v1448_v0, %v1254_v30  ;;  %v1451_v7 = vadd.f32 %v1785_v5, %v1387_v3  ;;  %v1442_v8 = vpop.f32.mrb[15].mxu1 }
 0x6ca   : > { %v1454_v9 = vadd.f32 %v1440_v4, %v1252_v28  ;;  %v1443_v10 = vadd.f32 %v1442_v8, %v1377_v61 }
 0x6cb   : > { %v1460_v11 = vmul.f32 0.70710677, %v1456_v6  ;;  %v1457_v12 = vadd.f32 %v1451_v7, %v1255_v31 }
 0x6cc   : > { %v1458_v14 = vmul.f32 0.70710677, %v1454_v9  ;;  %v1455_v2 = vadd.f32 %v1443_v10, %v1253_v29 }
 0x6cd   : > { %v1461_v15 = vmul.f32 0.70710677, %v1457_v12  ;;  %v1464_v17 = vmax.f32 %v1460_v11, 0.0 }
 0x6ce   : > { %v1459_v16 = vmul.f32 0.70710677, %v1455_v2  ;;  %v1462_v19 = vmax.f32 %v1458_v14, 0.0 }
 0x6cf   : > { %v1465_v18 = vmax.f32 %v1461_v15, 0.0 }
 0x6d0   : > { %v1463_v20 = vmax.f32 %v1459_v16, 0.0 }
 0x6d1   : > { %v1468_v21 = vpack.c.bf16 %v1465_v18, %v1464_v17 }
 0x6d2   : > { %v1467_v22 = vpack.c.bf16 %v1463_v20, %v1462_v19 }
 0x6d4   : > { %1787 = vmatpush3.bf16.msra.mxu0 %v1467_v22 }
 0x6d5   : > { %1788 = vmatprep.subr.bf16.mxu0 %v1925_v46 }
 0x6d8   : > { %1789 = vmatpush3.bf16.msra.mxu0 %v1468_v21 }
 0x6db   : > { %1791 = vmatmul.mubr.msk.bf16.vlgmr.msra.gmra.mrb[16].mxu0 %vm664_vm0, %v1466_v23 }
 0x7ae   : > { %v1512_v25 = vpop.f32.mrb[16].mxu0 }
 0x7af   : > { %v1513_v26 = vadd.f32 %v1512_v25, %v1473_v24  ;;  %v1792_v27 = vpop.f32.mrb[17].mxu0 }
 0x7b0   : > { %v1515_v28 = vpop.f32.mrb[18].mxu0 }
 0x7b1   : > { %v1686_v29 = vmul.f32 -1.442695, %v1513_v26  ;;  %v1793_v30 = vpop.f32.mrb[19].mxu0 }
 0x7b3   : > { %1856 = vpow2.f32 %v1686_v29 }
 0x7bd   : > { %v1857_v31 = vpop.eup %1856 }
 0x7be   : > { %v1522_v46 = vadd.f32 1.0, %v1857_v31 }
 0x7c0   : > { %1858 = vrcp.f32 %v1522_v46 }
 0x7ca   : > { %v1859_v32 = vpop.eup %1858 }
 0x7cb   : > { %v1525_v33 = vsel %vm1518_vm7, %v1859_v32, %v1513_v26 }
 0x7cc   : > { %1526 = vst [vmem:[%s610_s24] sm:$0xff] %v1525_v33 }
 0x7cd   : > { %1873 = shalt.err (!%p1870_p7)
}
 0x7ce   : > { %s1874_s21 = scalar_lea.hbm %s2287_s29, 128  ;;  %s1878_s17 = scalar_lea.hbm %s2370_s19, 384 }
 0x7cf   : > { %p1875_p9 = scmp.ne.s32.totalorder %s2287_s29, %s1874_s21  ;;  %p1879_p12 = scmp.lt.u32.totalorder %s2287_s29, %s2370_s19 }
 0x7d0   : > { %p1880_p13 = scmp.lt.u32.totalorder %s1878_s17, %s1874_s21  ;;  %p1882_p1 = scmp.lt.u32.totalorder %s1874_s21, %s2287_s29 }
 0x7d1   : > { %p1876_p10 = pnand %p1875_p9, %p2057_p6 }
 0x7d2   : > { %p1881_p0 = por %p1880_p13, %p1879_p12 }
 0x7d3   : > { %p1877_p11 = pneg %p1876_p10 }
 0x7d4   : > { %p1883_p2 = por %p1882_p1, %p1881_p0 }
 0x7d6   : > { %p1884_p3 = pnand %p1883_p2, %p1877_p11 }
 0x7d8   : > { %1887 = shalt.err (!%p1884_p3)
}
 0x7d9   : > { %1794 = dma.vmem_to_hbm [thread:$0]  (%p2057_p6), %s2289_s27, 128, %s2287_s29, %s1528_s26  }
 0x7da PF: > { %s2371_s18 = sld [smem:[#allocation9_spill]]  ;;  %s2372_s25 = sld [smem:[#allocation6_spill]] }
 0x7e0   : > { %p1800_p4 = scmp.ge.s32.totalorder %s2371_s18, 2  ;;  %s1553_s22 = sand.u32 1, %s2372_s25  }
 0x7e1   : > { %s1554_s23 = scalar_lea.sflag [#allocation4], %s1553_s22 }
 0x7e2   : > { %p1797_p5 = pnand %p1800_p4, %p2061_p8 }
 0x7e4   : > { %1905 = dma.done.wait (!%p1797_p5), %s1554_s23, 128  }
 0x7e5   : > { %1907 = vsyncadd (!%p1797_p5), %s1554_s23, 4294967168  ;;  %s2374_s27 = sld [smem:[#allocation10_spill]]  ;;  %s2375_s24 = sld [smem:[#allocation7_spill]] }
 0x7e6   : > { %s2376_s25 = sld [smem:[#allocation8_spill]]  ;;  %s2377_s26 = sld [smem:[#allocation11_spill]] }
 0x7eb   : > { %p27_p7 = scmp.ge.s32.totalorder %s2374_s27, 5  }
 0x7ed   :  { %29 = sbr.rel (!%p27_p7) target bundleno = 7 (0x7), region = 176 }
 0x7f4   :  { %1559 = vsyncpa [#allocation4], 1 }
 0x7f5   :  { %1561 = vsyncpa [#allocation4 + $0x1], 1 }

</bundles_post_ra>
